<compile_context>
chip_gen: v7x
topology: tpu7x:2x2x1
jax: 0.10.0
libtpu: 0.0.40
codegen_flags: <defaults>
</compile_context>

<pallas_src>
import functools

import jax
import jax.numpy as jnp
import numpy as np
from jax.experimental import pallas as pl
from jax.experimental.pallas import tpu as pltpu


def _grid_loss_kernel(x_ref, t_ref, out_ref, *, img_h, img_w, tb, bc, needs_mask):
    """One block of `tb` images, each flattened to a row of H*W lane elements."""
    # Sobel is linear -> diff first, one Sobel pass instead of two.
    d = x_ref[...].astype(jnp.float32) - t_ref[...].astype(jnp.float32)

    # ---- vertical (row) pass of the separable filters, replicate-clamped ----
    # Flat index i = h*W + w, so the vertical neighbour is a shift by +/- W.
    if img_h > 1:
        up = jnp.concatenate([d[:, :img_w], d[:, :-img_w]], axis=1)   # row h-1 (clamped)
        dn = jnp.concatenate([d[:, img_w:], d[:, -img_w:]], axis=1)   # row h+1 (clamped)
    else:
        up = d
        dn = d
    v = up + 2.0 * d + dn          # vertical [1, 2, 1]   (for Sobel-x)
    w = dn - up                    # vertical [-1, 0, 1]  (for Sobel-y)

    # ---- horizontal pass, replicate-clamped at image columns 0 / W-1 ----
    if img_w > 1:
        col = jax.lax.broadcasted_iota(jnp.int32, d.shape, 1) % img_w
        first_col = col == 0
        last_col = col == (img_w - 1)

        def shift_left(a):   # a[h, w-1], clamped at w == 0
            s = jnp.concatenate([a[:, :1], a[:, :-1]], axis=1)
            return jnp.where(first_col, a, s)

        def shift_right(a):  # a[h, w+1], clamped at w == W-1
            s = jnp.concatenate([a[:, 1:], a[:, -1:]], axis=1)
            return jnp.where(last_col, a, s)
    else:
        def shift_left(a):
            return a

        def shift_right(a):
            return a

    gx = shift_right(v) - shift_left(v)             # Sobel-x of (input - target)
    gy = shift_left(w) + 2.0 * w + shift_right(w)   # Sobel-y of (input - target)

    tot = jnp.abs(gx) + jnp.abs(gy)

    if needs_mask:
        # Last block may be ragged: zero out rows past B*C.
        rows = pl.program_id(0) * tb + jax.lax.broadcasted_iota(jnp.int32, d.shape, 0)
        tot = jnp.where(rows < bc, tot, 0.0)

    # One partial sum per block; both L1 terms share the same denominator so a
    # single combined sum is sufficient.
    out_ref[...] = jnp.sum(tot).reshape(1, 1, 1)


def grid_loss(inp, target):
    """Pallas implementation of GridLoss.forward."""
    if inp.ndim == 5:
        B, N, C, H, W = inp.shape
        inp = inp.reshape(-1, C, H, W)
        target = target.reshape(-1, C, H, W)
        n_channels = C
    else:
        n_channels = 3
    B, C, H, W = inp.shape
    assert C == n_channels, "4D path requires 3 channels (PyTorch groups=3)"

    BC = B * C
    HW = H * W

    # Free row-major reshapes: no HBM copy, no pre-padding pass, lane-dense rows.
    x = inp.reshape(BC, HW)
    t = target.reshape(BC, HW)

    # Images per block: ~1 MiB of f32 per input block (conservative so that the
    # in-kernel f32 temporaries + double-buffered inputs fit scoped VMEM on
    # v5e/v6e/v7x). Sublane dim must be a multiple of 8 unless it covers BC.
    tb = (1 << 20) // (HW * 4)
    tb = max(8, (tb // 8) * 8)
    if tb >= BC:
        tb = BC
    # TODO(synk): for very large H*W (a single-image block exceeding the VMEM
    # budget) the flattened spatial axis would additionally need tiling.
    num_blocks = pl.cdiv(BC, tb)
    needs_mask = (BC % tb) != 0

    kernel = functools.partial(
        _grid_loss_kernel, img_h=H, img_w=W, tb=tb, bc=BC, needs_mask=needs_mask)

    partials = pl.pallas_call(
        kernel,
        out_shape=jax.ShapeDtypeStruct((num_blocks, 1, 1), jnp.float32),
        grid_spec=pltpu.PrefetchScalarGridSpec(
            num_scalar_prefetch=0,
            grid=(num_blocks,),
            in_specs=[
                pl.BlockSpec((tb, HW), lambda i: (i, 0)),
                pl.BlockSpec((tb, HW), lambda i: (i, 0)),
            ],
            out_specs=pl.BlockSpec((1, 1, 1), lambda i: (i, 0, 0)),
        ),
        compiler_params=pltpu.CompilerParams(
            dimension_semantics=("parallel",),
            vmem_limit_bytes=32 * 1024 * 1024,
        ),
    )(x, t)

    # l1_loss(gx_in, gx_tgt) + l1_loss(gy_in, gy_tgt), both mean over BC*H*W.
    return jnp.sum(partials) / jnp.float32(BC * HW)


def _ref_grid_loss(x, t):
    """Pure-JAX reference mirroring the PyTorch module (for verification)."""
    B, C, H, W = x.shape
    kx = jnp.array([[-1, 0, 1], [-2, 0, 2], [-1, 0, 1]], jnp.float32)
    ky = jnp.array([[-1, -2, -1], [0, 0, 0], [1, 2, 1]], jnp.float32)

    def conv(img, k):
        img_p = jnp.pad(img, ((0, 0), (0, 0), (1, 1), (1, 1)), mode="edge")
        kern = jnp.tile(k[None, None], (C, 1, 1, 1))  # (C,1,3,3), depthwise
        return jax.lax.conv_general_dilated(
            img_p, kern, (1, 1), "VALID",
            dimension_numbers=("NCHW", "OIHW", "NCHW"),
            feature_group_count=C,
        )

    gxd = jnp.mean(jnp.abs(conv(x, kx) - conv(t, kx)))
    gyd = jnp.mean(jnp.abs(conv(x, ky) - conv(t, ky)))
    return gxd + gyd


if __name__ == "__main__":
    key = jax.random.PRNGKey(0)
    k1, k2 = jax.random.split(key)
    # 4D path => 3 channels (matches PyTorch default n_channels = 3)
    x = jax.random.normal(k1, (2, 3, 16, 16), dtype=jnp.float32)
    t = jax.random.normal(k2, (2, 3, 16, 16), dtype=jnp.float32)

    loss = jax.block_until_ready(grid_loss(x, t))
    ref = jax.block_until_ready(_ref_grid_loss(x, t))

    np.testing.assert_allclose(np.asarray(loss), np.asarray(ref),
                               rtol=1e-4, atol=1e-5)
    print("KERNEL_OK")
</pallas_src>

<mosaic_0001>
module attributes {stable_mosaic.version = 11 : i64} {
  func.func @_grid_loss_kernel(%arg0: i32, %arg1: memref<6x256xf32, #tpu.memory_space<vmem>>, %arg2: memref<6x256xf32, #tpu.memory_space<vmem>>, %arg3: memref<1x1x1xf32, #tpu.memory_space<vmem>>) attributes {dimension_semantics = [#tpu.dimension_semantics<parallel>], iteration_bounds = array<i64: 1>, scalar_prefetch = 0 : i64, scratch_operands = 0 : i64, tpu.core_type = #tpu.core_type<tc>, window_params = [{transform_indices = @transform_0, window_bounds = array<i64: 6, 256>}, {transform_indices = @transform_1, window_bounds = array<i64: 6, 256>}, {transform_indices = @transform_2, window_bounds = array<i64: 1, 1, 1>}]} {
    %c0 = arith.constant 0 : index
    %c0_0 = arith.constant 0 : index
    %0 = vector.load %arg1[%c0, %c0_0] : memref<6x256xf32, #tpu.memory_space<vmem>>, vector<6x256xf32>
    %c0_1 = arith.constant 0 : index
    %c0_2 = arith.constant 0 : index
    %1 = vector.load %arg2[%c0_1, %c0_2] : memref<6x256xf32, #tpu.memory_space<vmem>>, vector<6x256xf32>
    %2 = arith.subf %0, %1 : vector<6x256xf32>
    %3 = vector.extract_strided_slice %2 {offsets = [0, 0], sizes = [6, 16], strides = [1, 1]} : vector<6x256xf32> to vector<6x16xf32>
    %4 = vector.extract_strided_slice %2 {offsets = [0, 0], sizes = [6, 240], strides = [1, 1]} : vector<6x256xf32> to vector<6x240xf32>
    %5 = tpu.concatenate %3, %4 in 1 : vector<6x16xf32>, vector<6x240xf32> -> vector<6x256xf32>
    %6 = vector.extract_strided_slice %2 {offsets = [0, 16], sizes = [6, 240], strides = [1, 1]} : vector<6x256xf32> to vector<6x240xf32>
    %7 = vector.extract_strided_slice %2 {offsets = [0, 240], sizes = [6, 16], strides = [1, 1]} : vector<6x256xf32> to vector<6x16xf32>
    %8 = tpu.concatenate %6, %7 in 1 : vector<6x240xf32>, vector<6x16xf32> -> vector<6x256xf32>
    %cst = arith.constant 2.000000e+00 : f32
    %9 = vector.broadcast %cst : f32 to vector<6x256xf32>
    %10 = arith.mulf %9, %2 : vector<6x256xf32>
    %11 = arith.addf %5, %10 : vector<6x256xf32>
    %12 = arith.addf %11, %8 : vector<6x256xf32>
    %13 = arith.subf %8, %5 : vector<6x256xf32>
    %14 = tpu.iota {dimensions = array<i32: 1>} : vector<6x256xi32>
    %c16_i32 = arith.constant 16 : i32
    %c0_i32 = arith.constant 0 : i32
    %15 = arith.cmpi eq, %c16_i32, %c0_i32 : i32
    %c1_i32 = arith.constant 1 : i32
    %16 = arith.select %15, %c1_i32, %c16_i32 : i32
    %17 = vector.broadcast %16 : i32 to vector<6x256xi32>
    %18 = arith.remsi %14, %17 : vector<6x256xi32>
    %c0_i32_3 = arith.constant 0 : i32
    %19 = vector.broadcast %c0_i32_3 : i32 to vector<6x256xi32>
    %20 = arith.cmpi ne, %18, %19 : vector<6x256xi32>
    %c0_i32_4 = arith.constant 0 : i32
    %21 = vector.broadcast %c0_i32_4 : i32 to vector<6x256xi32>
    %22 = arith.cmpi slt, %18, %21 : vector<6x256xi32>
    %c0_i32_5 = arith.constant 0 : i32
    %23 = arith.cmpi slt, %16, %c0_i32_5 : i32
    %24 = vector.broadcast %23 : i1 to vector<6x256xi1>
    %25 = vector.broadcast %24 : vector<6x256xi1> to vector<6x256xi1>
    %26 = arith.xori %22, %25 : vector<6x256xi1>
    %27 = arith.andi %26, %20 : vector<6x256xi1>
    %28 = vector.broadcast %16 : i32 to vector<6x256xi32>
    %29 = arith.addi %18, %28 : vector<6x256xi32>
    %30 = arith.select %27, %29, %18 : vector<6x256xi1>, vector<6x256xi32>
    %c0_i32_6 = arith.constant 0 : i32
    %31 = vector.broadcast %c0_i32_6 : i32 to vector<6x256xi32>
    %32 = arith.cmpi eq, %30, %31 : vector<6x256xi32>
    %c15_i32 = arith.constant 15 : i32
    %33 = vector.broadcast %c15_i32 : i32 to vector<6x256xi32>
    %34 = arith.cmpi eq, %30, %33 : vector<6x256xi32>
    %35 = vector.extract_strided_slice %12 {offsets = [0, 1], sizes = [6, 255], strides = [1, 1]} : vector<6x256xf32> to vector<6x255xf32>
    %36 = vector.extract_strided_slice %12 {offsets = [0, 255], sizes = [6, 1], strides = [1, 1]} : vector<6x256xf32> to vector<6x1xf32>
    %37 = tpu.concatenate %35, %36 in 1 : vector<6x255xf32>, vector<6x1xf32> -> vector<6x256xf32>
    %38 = arith.select %34, %12, %37 : vector<6x256xi1>, vector<6x256xf32>
    %39 = vector.extract_strided_slice %12 {offsets = [0, 0], sizes = [6, 1], strides = [1, 1]} : vector<6x256xf32> to vector<6x1xf32>
    %40 = vector.extract_strided_slice %12 {offsets = [0, 0], sizes = [6, 255], strides = [1, 1]} : vector<6x256xf32> to vector<6x255xf32>
    %41 = tpu.concatenate %39, %40 in 1 : vector<6x1xf32>, vector<6x255xf32> -> vector<6x256xf32>
    %42 = arith.select %32, %12, %41 : vector<6x256xi1>, vector<6x256xf32>
    %43 = arith.subf %38, %42 : vector<6x256xf32>
    %44 = vector.extract_strided_slice %13 {offsets = [0, 0], sizes = [6, 1], strides = [1, 1]} : vector<6x256xf32> to vector<6x1xf32>
    %45 = vector.extract_strided_slice %13 {offsets = [0, 0], sizes = [6, 255], strides = [1, 1]} : vector<6x256xf32> to vector<6x255xf32>
    %46 = tpu.concatenate %44, %45 in 1 : vector<6x1xf32>, vector<6x255xf32> -> vector<6x256xf32>
    %47 = arith.select %32, %13, %46 : vector<6x256xi1>, vector<6x256xf32>
    %cst_7 = arith.constant 2.000000e+00 : f32
    %48 = vector.broadcast %cst_7 : f32 to vector<6x256xf32>
    %49 = arith.mulf %48, %13 : vector<6x256xf32>
    %50 = arith.addf %47, %49 : vector<6x256xf32>
    %51 = vector.extract_strided_slice %13 {offsets = [0, 1], sizes = [6, 255], strides = [1, 1]} : vector<6x256xf32> to vector<6x255xf32>
    %52 = vector.extract_strided_slice %13 {offsets = [0, 255], sizes = [6, 1], strides = [1, 1]} : vector<6x256xf32> to vector<6x1xf32>
    %53 = tpu.concatenate %51, %52 in 1 : vector<6x255xf32>, vector<6x1xf32> -> vector<6x256xf32>
    %54 = arith.select %34, %13, %53 : vector<6x256xi1>, vector<6x256xf32>
    %55 = arith.addf %50, %54 : vector<6x256xf32>
    %56 = math.absf %43 : vector<6x256xf32>
    %57 = math.absf %55 : vector<6x256xf32>
    %58 = arith.addf %56, %57 : vector<6x256xf32>
    %59 = vector.shape_cast %58 : vector<6x256xf32> to vector<1x6x256xf32>
    %cst_8 = arith.constant dense<0.000000e+00> : vector<1xf32>
    %60 = vector.multi_reduction <add>, %59, %cst_8 [1, 2] : vector<1x6x256xf32> to vector<1xf32>
    %61 = vector.shape_cast %60 : vector<1xf32> to vector<1x1x1xf32>
    %62 = vector.extract %61[0, 0, 0] : f32 from vector<1x1x1xf32>
    %63 = vector.broadcast %62 : f32 to vector<1x1x1xf32>
    %c0_9 = arith.constant 0 : index
    %c0_10 = arith.constant 0 : index
    %c0_11 = arith.constant 0 : index
    %64 = vector.load %arg3[%c0_9, %c0_10, %c0_11] : memref<1x1x1xf32, #tpu.memory_space<vmem>>, vector<1x1x1xf32>
    tpu.vector_store %arg3[%c0_9, %c0_10, %c0_11], %63 {strides = array<i32>} : memref<1x1x1xf32, #tpu.memory_space<vmem>>, vector<1x1x1xf32>,
    return
  }
  func.func @transform_0(%arg0: i32) -> (i32, i32) {
    %c0_i32 = arith.constant 0 : i32
    %c0_i32_0 = arith.constant 0 : i32
    return %arg0, %c0_i32 : i32, i32
  }
  func.func @transform_1(%arg0: i32) -> (i32, i32) {
    %c0_i32 = arith.constant 0 : i32
    %c0_i32_0 = arith.constant 0 : i32
    return %arg0, %c0_i32 : i32, i32
  }
  func.func @transform_2(%arg0: i32) -> (i32, i32, i32) {
    %c0_i32 = arith.constant 0 : i32
    %c0_i32_0 = arith.constant 0 : i32
    %c0_i32_1 = arith.constant 0 : i32
    return %arg0, %c0_i32, %c0_i32_0 : i32, i32, i32
  }
}

</mosaic_0001>

<bundles_post_ra>
// kernel: tpu_custom_call.1
= control target key start
LH: loop header
LB: loop body
LE: loop exit
PB: predicated region body
PF: predicated region fallthrough
CT: control target
= control target key end

     0   :  { %7 = vsyncpa [#allocation3], 0  ;;  %s372_s0 = inlined_call_operand.hbm [shape: f32[6,256], index: 0, kind: input, shape index: {}]   ;;  %s373_s1 = inlined_call_operand.hbm [shape: f32[6,256], index: 1, kind: input, shape index: {}]   ;;  %s374_s2 = inlined_call_operand.hbm [shape: f32[1,1,1], index: 2, kind: output, shape index: {}]  }
   0x1   :  { %8 = vsyncpa [#allocation6], 0 }
   0x2   :  { %9 = vsyncpa [#allocation4], 0  ;;  %s274_s9 = smov [#allocation2]   ;;  %s275_s11 = smov [#allocation5]  }
   0x3   :  { %s16_s10 = sshll.u32 %s274_s9, 4  ;;  %s26_s12 = sshll.u32 %s275_s11, 4  ;;  %s17_s10 = int_to_ptr.vmem [resolvable:$true] %s16_s10  ;;  %s27_s12 = int_to_ptr.vmem [resolvable:$true] %s26_s12 }
   0x4   :  { %s202_s15 = scalar_lea.hbm %s372_s0, 256 }
   0x5   :  { %p203_p0 = scmp.ne.s32.totalorder %s372_s0, %s202_s15  ;;  %p206_p1 = scmp.lt.u32.totalorder %s202_s15, %s372_s0 }
   0x7   :  { %p208_p2 = pnand %p206_p1, %p203_p0 }
   0x9   :  { %211 = shalt.err (!%p208_p2)
}
   0xa   :  { %s212_s20 = scalar_lea.vmem %s17_s10, 256  ;;  %p217_p4 = scmp.lt.s32.totalorder %s17_s10, %s17_s10 }
   0xb   :  { %p213_p3 = scmp.ne.s32.totalorder %s17_s10, %s212_s20  ;;  %p218_p5 = scmp.lt.s32.totalorder %s212_s20, %s212_s20 }
   0xd   :  { %p219_p6 = por %p218_p5, %p217_p4 }
   0xf   :  { %p220_p7 = pnand %p219_p6, %p213_p3 }
  0x11   :  { %223 = shalt.err (!%p220_p7)
}
  0x12   :  { %19 = dma.hbm_to_vmem [thread:$0]  %s372_s0, 256, %s17_s10, [#allocation3]  }
  0x13   :  { %s224_s25 = scalar_lea.hbm %s373_s1, 256 }
  0x14   :  { %p225_p8 = scmp.ne.s32.totalorder %s373_s1, %s224_s25  ;;  %p228_p9 = scmp.lt.u32.totalorder %s224_s25, %s373_s1 }
  0x16   :  { %p230_p10 = pnand %p228_p9, %p225_p8 }
  0x18   :  { %233 = shalt.err (!%p230_p10)
}
  0x19   :  { %s234_s30 = scalar_lea.vmem %s27_s12, 256  ;;  %p239_p12 = scmp.lt.s32.totalorder %s27_s12, %s27_s12 }
  0x1a   :  { %p235_p11 = scmp.ne.s32.totalorder %s27_s12, %s234_s30  ;;  %p240_p13 = scmp.lt.s32.totalorder %s234_s30, %s234_s30 }
  0x1c   :  { %p241_p0 = por %p240_p13, %p239_p12 }
  0x1e   :  { %p242_p1 = pnand %p241_p0, %p235_p11 }
  0x20   :  { %245 = shalt.err (!%p242_p1)
}
  0x21   :  { %29 = dma.hbm_to_vmem [thread:$0]  %s373_s1, 256, %s27_s12, [#allocation6]  }
  0x22   :  { %268 = dma.done.wait [#allocation3], 256  }
  0x23   :  { %269 = vsyncadd [#allocation3], 4294967040 }
  0x24   :  { %270 = dma.done.wait [#allocation6], 256  }
  0x25   :  { %271 = vsyncadd [#allocation6], 4294967040  ;;  %v36_v0 = vld [vmem:[#allocation2] sm:$0x3f]  ;;  %v38_v1 = vld [vmem:[#allocation5] sm:$0x3f]  ;;  %v70_v22 = vlaneseq }
  0x26   :  { %v37_v2 = vld [vmem:[#allocation2 + $0x8] sm:$0x3f]  ;;  %v40_v3 = vsub.f32 %v36_v0, %v38_v1  ;;  %v39_v4 = vld [vmem:[#allocation5 + $0x8] sm:$0x3f]  ;;  %s276_s4 = smov 112   ;;  %s277_s5 = smov 16  }
  0x27   :  { %v41_v5 = vsub.f32 %v37_v2, %v39_v4  ;;  %vm48_vm0 = vcmask 130048   ;;  %vm57_vm1 = vcmask 916480   ;;  %s278_s1 = smov 1   ;;  %s279_s6 = smov 127   ;;  %v71_v23 = vand.u32 127, %v70_v22 }
  0x28   :  { %53 = vrot.lane.b32.xlu1 %v40_v3, %s276_s4  ;;  %44 = vrot.lane.b32.xlu0 %v40_v3, %s277_s5  ;;  %v62_v9 = vmul.f32 2.0, %v40_v3  ;;  %vm118_vm2 = vcmask 7168   ;;  %vm107_vm3 = vcmask 1039360   ;;  %vm161_vm8 = vcmask 1045504   ;;  %s280_s7 = smov [#allocation7]  }
  0x29   :  { %v63_v8 = vmul.f32 2.0, %v41_v5  ;;  %v72_v24 = vadd.s32 128, %v71_v23  ;;  %v77_v27 = vand.u32 15, %v71_v23  ;;  %s183_s8 = sshll.u32 %s280_s7, 4  ;;  %vm175_vm9 = vcmask 0   ;;  %s184_s8 = int_to_ptr.vmem [resolvable:$true] %s183_s8 }
  0x2a   :  { %s246_s10 = scalar_lea.vmem %s184_s8, 16  ;;  %s250_s11 = scalar_lea.vmem %s184_s8, 32 }
  0x2b   :  { %v84_v28 = vand.u32 15, %v72_v24  ;;  %vm320_vm4 = vcmp.eq.s32.totalorder %v77_v27, 0  ;;  %vm334_vm7 = vcmp.eq.s32.totalorder %v77_v27, 15  ;;  %p247_p2 = scmp.ne.s32.totalorder %s184_s8, %s246_s10  ;;  %p251_p3 = scmp.lt.s32.totalorder %s184_s8, %s184_s8 }
  0x2c   :  { %55 = vrot.lane.b32.xlu1 %v41_v5, %s276_s4  ;;  %46 = vrot.lane.b32.xlu0 %v41_v5, %s277_s5  ;;  %p252_p4 = scmp.lt.s32.totalorder %s250_s11, %s246_s10 }
  0x2d   :  { %vm325_vm5 = vcmp.eq.s32.totalorder %v84_v28, 0  ;;  %vm330_vm6 = vcmp.eq.s32.totalorder %v84_v28, 15 }
  0x2e   :  { %p253_p5 = por %p252_p4, %p251_p3 }
  0x30   :  { %p254_p6 = pnand %p253_p5, %p247_p2 }
  0x9a   :  { %v54_v6 = vpop.permute.xlu1 %53  ;;  %v45_v7 = vpop.permute.xlu0 %44 }
  0x9b   :  { %v52_v12 = vsel %vm48_vm0, %v40_v3, %v45_v7 }
  0x9c   :  { %v64_v19 = vadd.f32 %v62_v9, %v52_v12 }
  0x9e   :  { %v56_v10 = vpop.permute.xlu1 %55  ;;  %v47_v11 = vpop.permute.xlu0 %46 }
  0x9f   :  { %v58_v13 = vsel %vm57_vm1, %v54_v6, %v56_v10  ;;  %v61_v14 = vsel %vm57_vm1, %v56_v10, %v41_v5  ;;  %v49_v15 = vsel %vm48_vm0, %v45_v7, %v47_v11 }
  0xa0   :  { %v68_v16 = vsub.f32 %v58_v13, %v52_v12  ;;  %v65_v17 = vadd.f32 %v63_v8, %v49_v15  ;;  %v69_v18 = vsub.f32 %v61_v14, %v49_v15  ;;  %v66_v20 = vadd.f32 %v64_v19, %v58_v13 }
  0xa2   :  { %129 = vrot.lane.b32.xlu0 %v68_v16, %s278_s1  ;;  %131 = vrot.lane.b32.xlu1 %v69_v18, %s278_s1  ;;  %v67_v21 = vadd.f32 %v65_v17, %v61_v14  ;;  %v139_v44 = vmul.f32 2.0, %v68_v16  ;;  %v140_v48 = vmul.f32 2.0, %v69_v18 }
  0xa6   :  { %105 = vrot.lane.b32.xlu1 %v67_v21, %s279_s6  ;;  %103 = vrot.lane.b32.xlu0 %v66_v20, %s279_s6 }
  0xaa   :  { %116 = vrot.lane.b32.xlu1 %v67_v21, %s278_s1  ;;  %114 = vrot.lane.b32.xlu0 %v66_v20, %s278_s1 }
  0xae   :  { %145 = vrot.lane.b32.xlu1 %v69_v18, %s279_s6  ;;  %143 = vrot.lane.b32.xlu0 %v68_v16, %s279_s6 }
 0x114   :  { %v132_v25 = vpop.permute.xlu1 %131  ;;  %v130_v26 = vpop.permute.xlu0 %129 }
 0x115   :  { %v136_v32 = vsel %vm118_vm2, %v68_v16, %v130_v26  ;;  %v133_v34 = vsel %vm118_vm2, %v130_v26, %v132_v25 }
 0x116   :  { %v137_v40 = vsel %vm320_vm4, %v68_v16, %v136_v32  ;;  %v138_v45 = vsel %vm325_vm5, %v69_v18, %v133_v34 }
 0x117   :  { %v141_v50 = vadd.f32 %v139_v44, %v137_v40  ;;  %v142_v55 = vadd.f32 %v140_v48, %v138_v45 }
 0x118   :  { %v106_v29 = vpop.permute.xlu1 %105  ;;  %v104_v30 = vpop.permute.xlu0 %103 }
 0x119   :  { %v108_v37 = vsel %vm107_vm3, %v104_v30, %v106_v29  ;;  %v111_v41 = vsel %vm107_vm3, %v106_v29, %v67_v21 }
 0x11a   :  { %v112_v49 = vsel %vm334_vm7, %v66_v20, %v108_v37  ;;  %v113_v51 = vsel %vm330_vm6, %v67_v21, %v111_v41 }
 0x11c   :  { %v117_v38 = vpop.permute.xlu1 %116  ;;  %v115_v39 = vpop.permute.xlu0 %114 }
 0x11d   :  { %v119_v42 = vsel %vm118_vm2, %v115_v39, %v117_v38  ;;  %v122_v43 = vsel %vm118_vm2, %v66_v20, %v115_v39 }
 0x11e   :  { %v123_v46 = vsel %vm320_vm4, %v66_v20, %v122_v43  ;;  %v124_v47 = vsel %vm325_vm5, %v67_v21, %v119_v42 }
 0x11f   :  { %v125_v52 = vsub.f32 %v112_v49, %v123_v46  ;;  %v126_v56 = vsub.f32 %v113_v51, %v124_v47 }
 0x120   :  { %v146_v53 = vpop.permute.xlu1 %145  ;;  %v144_v54 = vpop.permute.xlu0 %143 }
 0x121   :  { %v150_v57 = vsel %vm107_vm3, %v146_v53, %v69_v18  ;;  %v147_v58 = vsel %vm107_vm3, %v144_v54, %v146_v53  ;;  %v155_v63 = vand.u32 2147483647, %v125_v52  ;;  %v156_v0 = vand.u32 2147483647, %v126_v56 }
 0x122   :  { %v152_v59 = vsel %vm330_vm6, %v69_v18, %v150_v57  ;;  %v151_v60 = vsel %vm334_vm7, %v68_v16, %v147_v58 }
 0x123   :  { %v154_v61 = vadd.f32 %v152_v59, %v142_v55  ;;  %v153_v62 = vadd.f32 %v151_v60, %v141_v50 }
 0x125   :  { %v158_v1 = vand.u32 2147483647, %v154_v61  ;;  %v157_v2 = vand.u32 2147483647, %v153_v62 }
 0x127   :  { %v159_v3 = vadd.f32 %v157_v2, %v155_v63  ;;  %v160_v4 = vadd.f32 %v158_v1, %v156_v0 }
 0x129   :  { %v162_v5 = vsel %vm161_vm8, %v159_v3, 0.0  ;;  %v163_v6 = vsel %vm161_vm8, %v160_v4, 0.0 }
 0x12a   :  { %v164_v7 = vadd.f32 %v163_v6, %v162_v5 }
 0x12c   :  { %165 = vadd.xlane.f32.xlu0 %v164_v7 }
 0x1b9   :  { %v166_v8 = vpop.xlane.xlu0 %165 }
 0x1ba   :  { %v167_v9 = vrot.slane %v166_v8, 4 }
 0x1bc   :  { %v168_v10 = vadd.f32 %v167_v9, %v166_v8 }
 0x1be   :  { %v169_v11 = vrot.slane %v168_v10, 2 }
 0x1c0   :  { %v170_v12 = vadd.f32 %v169_v11, %v168_v10 }
 0x1c2   :  { %v171_v13 = vrot.slane %v170_v12, 1 }
 0x1c4   :  { %v172_v14 = vadd.f32 %v171_v13, %v170_v12 }
 0x1c6   :  { %193 = vpush %v172_v14 }
 0x1f7   :  { %s194_s9 = spop %193 }
 0x1f8   :  { %v174_v15 = vstv %s194_s9 }
 0x1f9   :  { %176 = vst.msk [vmem:[#allocation7] sm:$0x1] %vm175_vm9, %v174_v15 }
 0x1fa   :  { %257 = shalt.err (!%p254_p6)
}
 0x1fb   :  { %s258_s14 = scalar_lea.hbm %s374_s2, 16 }
 0x1fc   :  { %p259_p7 = scmp.ne.s32.totalorder %s374_s2, %s258_s14  ;;  %p262_p8 = scmp.lt.u32.totalorder %s258_s14, %s374_s2 }
 0x1fe   :  { %p264_p9 = pnand %p262_p8, %p259_p7 }
 0x200   :  { %267 = shalt.err (!%p264_p9)
}
 0x201   :  { %186 = dma.vmem_to_hbm [thread:$0]  %s184_s8, 16, %s374_s2, [#allocation4]  }
 0x202   :  { %272 = dma.done.wait [#allocation4], 16  }
 0x203   :  { %273 = vsyncadd [#allocation4], 4294967280 }
 0x204   :  { %190 = vsyncpa [#allocation3], 1 }
 0x205   :  { %191 = vsyncpa [#allocation6], 1 }
 0x206   :  { %192 = vsyncpa [#allocation4], 1 }

</bundles_post_ra>
